<compile_context>
chip_gen: v6e
topology: v6e:2x2x1
jax: 0.10.0
libtpu: 0.0.40
codegen_flags: <defaults>
</compile_context>

<pallas_src>
import jax
import jax.numpy as jnp
from jax import lax
from jax.experimental import pallas as pl
from jax.experimental.pallas import tpu as pltpu

EPS = 1e-5


def _fusion_kernel(x1_ref, x2_ref, w1_ref, w2_ref, b_ref, g_ref, beta_ref, o_ref):
    # Linear on the current feature tile: y = x1 @ W1 + x2 @ W2 + b   (B, tn)
    y = jnp.dot(x1_ref[...], w1_ref[...], preferred_element_type=jnp.float32)
    y = y + jnp.dot(x2_ref[...], w2_ref[...], preferred_element_type=jnp.float32)
    y = y + b_ref[...]

    # One-pass biased batch statistics (PyTorch training-mode BatchNorm1d).
    batch = y.shape[0]
    inv_b = 1.0 / batch
    mean = jnp.sum(y, axis=0, keepdims=True) * inv_b           # (1, tn)
    mean_sq = jnp.sum(y * y, axis=0, keepdims=True) * inv_b    # E[y^2]
    var = jnp.maximum(mean_sq - mean * mean, 0.0)              # guard cancellation

    # Fold BN affine into a single FMA:  o = y * scale + shift
    scale = g_ref[...] * lax.rsqrt(var + EPS)                  # (1, tn)
    shift = beta_ref[...] - mean * scale                       # (1, tn)
    o_ref[...] = (y * scale + shift).astype(o_ref.dtype)


def _pick_tile_n(d):
    # Lane-dense feature tiles: prefer 256 (full v6e/v7x MXU width), then 128.
    for cand in (256, 128):
        if d % cand == 0:
            return cand
    return d  # small / odd D: single full-width block


def multi_layer_neural_fusion_network(x1, x2, w_t, bias, gamma, beta, tile_n=None):
    """x1, x2: (B, D) f32.  w_t: (2D, D) = W^T.  bias/gamma/beta: (1, D) or (D,)."""
    B, D = x1.shape
    assert x2.shape == (B, D)
    assert w_t.shape == (2 * D, D)

    if tile_n is None:
        tile_n = _pick_tile_n(D)
    assert D % tile_n == 0
    n_tiles = D // tile_n

    # Pre-split W^T into the x1-half and x2-half -> two clean (D, D) MXU operands.
    w1 = w_t[:D]
    w2 = w_t[D:]

    bias = jnp.reshape(bias, (1, D)).astype(jnp.float32)
    gamma = jnp.reshape(gamma, (1, D)).astype(jnp.float32)
    beta = jnp.reshape(beta, (1, D)).astype(jnp.float32)

    # VMEM budget: resident x1/x2 + double-buffered W / params / output tiles.
    itemsize = 4
    vmem_bytes = itemsize * (
        2 * B * D                 # x1, x2 resident
        + 2 * (2 * D * tile_n)    # w1, w2 tiles (double-buffered)
        + 2 * (3 * tile_n)        # bias / gamma / beta tiles
        + 2 * (B * tile_n)        # output tile
    )
    vmem_limit = int(min(max(2 * vmem_bytes, 8 << 20), 64 << 20))

    return pl.pallas_call(
        _fusion_kernel,
        out_shape=jax.ShapeDtypeStruct((B, D), jnp.float32),
        grid=(n_tiles,),
        in_specs=[
            pl.BlockSpec((B, D), lambda j: (0, 0)),         # x1 (resident)
            pl.BlockSpec((B, D), lambda j: (0, 0)),         # x2 (resident)
            pl.BlockSpec((D, tile_n), lambda j: (0, j)),    # W^T[:D] tile (streamed)
            pl.BlockSpec((D, tile_n), lambda j: (0, j)),    # W^T[D:] tile (streamed)
            pl.BlockSpec((1, tile_n), lambda j: (0, j)),    # bias
            pl.BlockSpec((1, tile_n), lambda j: (0, j)),    # gamma
            pl.BlockSpec((1, tile_n), lambda j: (0, j)),    # beta
        ],
        out_specs=pl.BlockSpec((B, tile_n), lambda j: (0, j)),
        compiler_params=pltpu.CompilerParams(
            dimension_semantics=("parallel",),   # feature tiles are independent
            vmem_limit_bytes=vmem_limit,
        ),
    )(x1, x2, w1, w2, bias, gamma, beta)


def _reference(x1, x2, w_t, bias, gamma, beta):
    x = jnp.concatenate([x1, x2], axis=1)
    y = x @ w_t + bias.reshape(1, -1)
    mean = jnp.mean(y, axis=0, keepdims=True)
    var = jnp.mean((y - mean) ** 2, axis=0, keepdims=True)
    return (y - mean) / jnp.sqrt(var + EPS) * gamma.reshape(1, -1) + beta.reshape(1, -1)


if __name__ == "__main__":
    # input_dim = 256 (two lane-dense 128-wide feature tiles), batch = 64.
    B, D = 64, 256

    key = jax.random.PRNGKey(0)
    k1, k2, kw, kb = jax.random.split(key, 4)

    x1 = jax.random.normal(k1, (B, D), dtype=jnp.float32)
    x2 = jax.random.normal(k2, (B, D), dtype=jnp.float32)

    # PyTorch nn.Linear default init: U(-1/sqrt(fan_in), 1/sqrt(fan_in)), fan_in = 2D.
    fan_in = 2 * D
    bound = 1.0 / (fan_in ** 0.5)
    w = jax.random.uniform(kw, (D, 2 * D), minval=-bound, maxval=bound, dtype=jnp.float32)
    bias = jax.random.uniform(kb, (1, D), minval=-bound, maxval=bound, dtype=jnp.float32)
    w_t = w.T  # (2D, D) so the kernel computes x @ W^T

    # Fresh BatchNorm1d affine params.
    gamma = jnp.ones((1, D), dtype=jnp.float32)
    beta = jnp.zeros((1, D), dtype=jnp.float32)

    out = multi_layer_neural_fusion_network(x1, x2, w_t, bias, gamma, beta, tile_n=128)
    out = jax.block_until_ready(out)

    ref = _reference(x1, x2, w_t, bias, gamma, beta)
    assert out.shape == (B, D)
    assert jnp.allclose(out, ref, atol=2e-4, rtol=2e-4)

    print("KERNEL_OK")
</pallas_src>

<mosaic_0001>
module attributes {stable_mosaic.version = 11 : i64} {
  func.func @_fusion_kernel(%arg0: i32, %arg1: memref<64x256xf32, #tpu.memory_space<vmem>>, %arg2: memref<64x256xf32, #tpu.memory_space<vmem>>, %arg3: memref<256x128xf32, #tpu.memory_space<vmem>>, %arg4: memref<256x128xf32, #tpu.memory_space<vmem>>, %arg5: memref<1x128xf32, #tpu.memory_space<vmem>>, %arg6: memref<1x128xf32, #tpu.memory_space<vmem>>, %arg7: memref<1x128xf32, #tpu.memory_space<vmem>>, %arg8: memref<64x128xf32, #tpu.memory_space<vmem>>) attributes {dimension_semantics = [#tpu.dimension_semantics<parallel>], iteration_bounds = array<i64: 2>, scalar_prefetch = 0 : i64, scratch_operands = 0 : i64, tpu.core_type = #tpu.core_type<tc>, window_params = [{pipeline_mode = #tpu.pipeline_mode<synchronous>, transform_indices = @transform_0, window_bounds = array<i64: 64, 256>}, {pipeline_mode = #tpu.pipeline_mode<synchronous>, transform_indices = @transform_1, window_bounds = array<i64: 64, 256>}, {transform_indices = @transform_2, window_bounds = array<i64: 256, 128>}, {transform_indices = @transform_3, window_bounds = array<i64: 256, 128>}, {transform_indices = @transform_4, window_bounds = array<i64: 1, 128>}, {transform_indices = @transform_5, window_bounds = array<i64: 1, 128>}, {transform_indices = @transform_6, window_bounds = array<i64: 1, 128>}, {transform_indices = @transform_7, window_bounds = array<i64: 64, 128>}]} {
    %c0 = arith.constant 0 : index
    %c0_0 = arith.constant 0 : index
    %0 = vector.load %arg1[%c0, %c0_0] : memref<64x256xf32, #tpu.memory_space<vmem>>, vector<64x256xf32>
    %c0_1 = arith.constant 0 : index
    %c0_2 = arith.constant 0 : index
    %1 = vector.load %arg3[%c0_1, %c0_2] : memref<256x128xf32, #tpu.memory_space<vmem>>, vector<256x128xf32>
    %cst = arith.constant dense<0.000000e+00> : vector<64x128xf32>
    %2 = tpu.matmul %0, %1, %cst {dimension_numbers = #tpu.dot_dimension_numbers<[1], [0], [0], [1], [0, 0, 1, 1], [], []>} : vector<64x256xf32>, vector<256x128xf32>, vector<64x128xf32> -> vector<64x128xf32>
    %c0_3 = arith.constant 0 : index
    %c0_4 = arith.constant 0 : index
    %3 = vector.load %arg2[%c0_3, %c0_4] : memref<64x256xf32, #tpu.memory_space<vmem>>, vector<64x256xf32>
    %c0_5 = arith.constant 0 : index
    %c0_6 = arith.constant 0 : index
    %4 = vector.load %arg4[%c0_5, %c0_6] : memref<256x128xf32, #tpu.memory_space<vmem>>, vector<256x128xf32>
    %cst_7 = arith.constant dense<0.000000e+00> : vector<64x128xf32>
    %5 = tpu.matmul %3, %4, %cst_7 {dimension_numbers = #tpu.dot_dimension_numbers<[1], [0], [0], [1], [0, 0, 1, 1], [], []>} : vector<64x256xf32>, vector<256x128xf32>, vector<64x128xf32> -> vector<64x128xf32>
    %6 = arith.addf %2, %5 : vector<64x128xf32>
    %c0_8 = arith.constant 0 : index
    %c0_9 = arith.constant 0 : index
    %7 = vector.load %arg5[%c0_8, %c0_9] : memref<1x128xf32, #tpu.memory_space<vmem>>, vector<1x128xf32>
    %8 = vector.broadcast %7 : vector<1x128xf32> to vector<64x128xf32>
    %9 = arith.addf %6, %8 : vector<64x128xf32>
    %cst_10 = arith.constant dense<0.000000e+00> : vector<128xf32>
    %10 = vector.multi_reduction <add>, %9, %cst_10 [0] : vector<64x128xf32> to vector<128xf32>
    %11 = vector.shape_cast %10 : vector<128xf32> to vector<1x128xf32>
    %cst_11 = arith.constant 1.562500e-02 : f32
    %12 = vector.broadcast %cst_11 : f32 to vector<1x128xf32>
    %13 = arith.mulf %11, %12 : vector<1x128xf32>
    %14 = arith.mulf %9, %9 : vector<64x128xf32>
    %cst_12 = arith.constant dense<0.000000e+00> : vector<128xf32>
    %15 = vector.multi_reduction <add>, %14, %cst_12 [0] : vector<64x128xf32> to vector<128xf32>
    %16 = vector.shape_cast %15 : vector<128xf32> to vector<1x128xf32>
    %cst_13 = arith.constant 1.562500e-02 : f32
    %17 = vector.broadcast %cst_13 : f32 to vector<1x128xf32>
    %18 = arith.mulf %16, %17 : vector<1x128xf32>
    %19 = arith.mulf %13, %13 : vector<1x128xf32>
    %20 = arith.subf %18, %19 : vector<1x128xf32>
    %cst_14 = arith.constant 0.000000e+00 : f32
    %21 = vector.broadcast %cst_14 : f32 to vector<1x128xf32>
    %22 = arith.maximumf %20, %21 : vector<1x128xf32>
    %c0_15 = arith.constant 0 : index
    %c0_16 = arith.constant 0 : index
    %23 = vector.load %arg6[%c0_15, %c0_16] : memref<1x128xf32, #tpu.memory_space<vmem>>, vector<1x128xf32>
    %cst_17 = arith.constant 9.99999974E-6 : f32
    %24 = vector.broadcast %cst_17 : f32 to vector<1x128xf32>
    %25 = arith.addf %22, %24 : vector<1x128xf32>
    %26 = math.rsqrt %25 : vector<1x128xf32>
    %27 = arith.mulf %23, %26 : vector<1x128xf32>
    %c0_18 = arith.constant 0 : index
    %c0_19 = arith.constant 0 : index
    %28 = vector.load %arg7[%c0_18, %c0_19] : memref<1x128xf32, #tpu.memory_space<vmem>>, vector<1x128xf32>
    %29 = arith.mulf %13, %27 : vector<1x128xf32>
    %30 = arith.subf %28, %29 : vector<1x128xf32>
    %31 = vector.broadcast %27 : vector<1x128xf32> to vector<64x128xf32>
    %32 = arith.mulf %9, %31 : vector<64x128xf32>
    %33 = vector.broadcast %30 : vector<1x128xf32> to vector<64x128xf32>
    %34 = arith.addf %32, %33 : vector<64x128xf32>
    %c0_20 = arith.constant 0 : index
    %c0_21 = arith.constant 0 : index
    %35 = vector.load %arg8[%c0_20, %c0_21] : memref<64x128xf32, #tpu.memory_space<vmem>>, vector<64x128xf32>
    tpu.vector_store %arg8[%c0_20, %c0_21], %34 {strides = array<i32>} : memref<64x128xf32, #tpu.memory_space<vmem>>, vector<64x128xf32>,
    return
  }
  func.func @transform_0(%arg0: i32) -> (i32, i32) {
    %c0_i32 = arith.constant 0 : i32
    %c0_i32_0 = arith.constant 0 : i32
    %c0_i32_1 = arith.constant 0 : i32
    return %c0_i32, %c0_i32_0 : i32, i32
  }
  func.func @transform_1(%arg0: i32) -> (i32, i32) {
    %c0_i32 = arith.constant 0 : i32
    %c0_i32_0 = arith.constant 0 : i32
    %c0_i32_1 = arith.constant 0 : i32
    return %c0_i32, %c0_i32_0 : i32, i32
  }
  func.func @transform_2(%arg0: i32) -> (i32, i32) {
    %c0_i32 = arith.constant 0 : i32
    %c0_i32_0 = arith.constant 0 : i32
    return %c0_i32, %arg0 : i32, i32
  }
  func.func @transform_3(%arg0: i32) -> (i32, i32) {
    %c0_i32 = arith.constant 0 : i32
    %c0_i32_0 = arith.constant 0 : i32
    return %c0_i32, %arg0 : i32, i32
  }
  func.func @transform_4(%arg0: i32) -> (i32, i32) {
    %c0_i32 = arith.constant 0 : i32
    %c0_i32_0 = arith.constant 0 : i32
    return %c0_i32, %arg0 : i32, i32
  }
  func.func @transform_5(%arg0: i32) -> (i32, i32) {
    %c0_i32 = arith.constant 0 : i32
    %c0_i32_0 = arith.constant 0 : i32
    return %c0_i32, %arg0 : i32, i32
  }
  func.func @transform_6(%arg0: i32) -> (i32, i32) {
    %c0_i32 = arith.constant 0 : i32
    %c0_i32_0 = arith.constant 0 : i32
    return %c0_i32, %arg0 : i32, i32
  }
  func.func @transform_7(%arg0: i32) -> (i32, i32) {
    %c0_i32 = arith.constant 0 : i32
    %c0_i32_0 = arith.constant 0 : i32
    return %c0_i32, %arg0 : i32, i32
  }
}

</mosaic_0001>

<bundles_post_ra>
// kernel: tpu_custom_call.1
= control target key start
LH: loop header
LB: loop body
LE: loop exit
PB: predicated region body
PF: predicated region fallthrough
CT: control target
= control target key end

     0   :  { %s1773_s0 = inlined_call_operand.hbm [shape: f32[64,256], index: 0, kind: input, shape index: {}]   ;;  %s1774_s1 = inlined_call_operand.hbm [shape: f32[64,256], index: 1, kind: input, shape index: {}]   ;;  %s1775_s2 = inlined_call_operand.hbm [shape: f32[256,256], index: 2, kind: input, shape index: {}]   ;;  %s1776_s3 = inlined_call_operand.hbm [shape: f32[256,256], index: 3, kind: input, shape index: {}]   ;;  %s1777_s4 = inlined_call_operand.vmem [shape: f32[1,256], index: 4, kind: input, shape index: {}]   ;;  %s1778_s5 = inlined_call_operand.vmem [shape: f32[1,256], index: 5, kind: input, shape index: {}]   ;;  %s1779_s6 = inlined_call_operand.vmem [shape: f32[1,256], index: 6, kind: input, shape index: {}]   ;;  %s1780_s7 = inlined_call_operand.hbm [shape: f32[64,256], index: 7, kind: output, shape index: {}]  }
   0x1   :  { %1792 = sst [smem:[#allocation17_spill]] %s1773_s0 }
   0x2   :  { %12 = vsyncpa [#allocation3], 0 }
   0x3   :  { %13 = vsyncpa [#allocation6], 0 }
   0x4   :  { %14 = vsyncpa [#allocation4], 0 }
   0x5   :  { %16 = vsyncpa [#allocation4 + $0x1], 0  ;;  %s1403_s24 = smov 0   ;;  %s1405_s25 = smov 0  }
   0x6   :  { %s1407_s26 = smov 0   ;;  %s1409_s27 = smov 0  }
   0x7 LB: > { %s1424_s28 = sadd.s32 4294967295, %s1349_s27   ;;  %s956_s29 = sadd.s32 4294967294, %s1349_s27   ;;  %s1349_s27 = sphi %s1409_s27, %s1818_s27   ;;  %s1345_s26 = sphi %s1407_s26, %s1822_s26   ;;  %s1341_s25 = sphi %s1405_s25, %s1821_s25   ;;  %s1337_s24 = sphi %s1403_s24, %s1820_s24  }
   0x8   : > { %s1428_s30 = sadd.s32 1, %s1349_s27   ;;  %s71_s8 = sadd.s32 1, %s1345_s26 }
   0x9   : > { %1793 = sst [smem:[#allocation14_spill]] %s1428_s30  ;;  %s68_s9 = ssub.s32 %s1349_s27, %s1428_s30 }
   0xa   : > { %p78_p0 = scmp.ne.s32.totalorder %s1345_s26, %s1341_s25  ;;  %p69_p1 = scmp.eq.s32.totalorder %s68_s9, 0 }
   0xb   : > { %p79_p2 = scmp.eq.s32.totalorder %s1349_s27, 0  ;;  %p84_p3 = scmp.ne.s32.totalorder %s1341_s25, %s1337_s24 }
   0xc   : > { %p1788_p4 = scmp.eq.s32.totalorder %s1424_s28, 0  ;;  %p212_p7 = scmp.eq.s32.totalorder %s1424_s28, 1 }
   0xd   : > { %s1440_s10 = scalar_select %p69_p1, %s1345_s26, %s71_s8  }
   0xe   : > { %p1442_p5 = por %p79_p2, %p78_p0  ;;  %p1448_p6 = por %p1788_p4, %p84_p3 }
   0xf   : > { %1794 = sst [smem:[#allocation15_spill]] %s1440_s10  ;;  %p218_p8 = scmp.eq.s32.totalorder %s956_s29, 1 }
  0x10   : > { %s1796_s12 = scalar_select %p1448_p6, 1, 0 }
  0x11   : > { %p957_p9 = scmp.ge.s32.totalorder %s1349_s27, 1  ;;  %p225_p10 = scmp.lt.s32.totalorder %s1349_s27, 3 }
  0x12   : > { %p1455_p11 = por %p212_p7, %p78_p0  ;;  %p1459_p12 = por %p218_p8, %p84_p3 }
  0x13   : > { %p1463_p13 = pnand %p957_p9, %p225_p10  ;;  %s1351_s16 = smov [#allocation2]  }
  0x14   : > { %s1797_s13 = scalar_select %p1455_p11, 1, 0 }
  0x15   : > { %s1798_s14 = scalar_select %p1459_p12, 1, 0 }
  0x16   : > { %s1800_s15 = scalar_select %p1463_p13, 1, 0 }
  0x17   : > { %1799 = sst [smem:[#allocation16_spill]] %s1798_s14  ;;  %p1102_p1 = pneg %p1463_p13 }
  0x18   : > { %s237_s17 = sshll.u32 %s1351_s16, 4  ;;  %p1122_p3 = scmp.lt.s32.totalorder %s1349_s27, 2  ;;  %s238_s17 = int_to_ptr.vmem [resolvable:$true] %s237_s17 }
  0x19   : > { %p1471_p2 = pnand %p1102_p1, %p1788_p4  ;;  %s264_s19 = sand.u32 1, %s1349_s27  }
  0x1a   : > { %s1180_s20 = scalar_lea.vmem %s238_s17, 2048  ;;  %p1188_p12 = scmp.lt.s32.totalorder %s238_s17, %s238_s17 }
  0x1b   : > { %p1789_p7 = pneg %p1471_p2  ;;  %p1181_p8 = scmp.ne.s32.totalorder %s238_s17, %s1180_s20 }
  0x1c   : > { %p1189_p11 = scmp.lt.s32.totalorder %s1180_s20, %s1180_s20 }
  0x1d   : > { %p1183_p9 = pnand %p1181_p8, %p1789_p7 }
  0x1e   : > { %p1190_p6 = por %p1189_p11, %p1188_p12 }
  0x1f   : > { %p1184_p10 = pneg %p1183_p9 }
  0x21   : > { %p1191_p1 = pnand %p1190_p6, %p1184_p10 }
  0x23   : > { %1194 = shalt.err (!%p1191_p1)
}
  0x24   : > { %s1352_s21 = smov 256   ;;  %s1786_s22 = smov 16  }
  0x25   : > { %s1802_s0 = sld [smem:[#allocation17_spill]]  ;;  %p1495_p6 = pnand %p1122_p3, %p1442_p5 }
  0x26   : > { %s266_s9 = sand.u32 1, %s1345_s26   ;;  %s1787_s20 = sshll.u32 %s1349_s27, 7 }
  0x27   : > { %s1500_s16 = sshll.u32 %s266_s9, 8  ;;  %s1508_s14 = scalar_lea.hbm %s1775_s2, %s1787_s20 }
  0x28   : > { %s268_s11 = scalar_lea.vmem [#allocation7], %s1500_s16  ;;  %s1513_s23 = scalar_lea.sflag [#allocation3], %s264_s19 }
  0x29   : > { %s1195_s29 = scalar_lea.hbm %s1508_s14, 4096  ;;  %p1197_p11 = pneg %p1495_p6 }
  0x2a   : > { %p1196_p5 = scmp.ne.s32.totalorder %s1508_s14, %s1195_s29  ;;  %s1200_s9 = scalar_lea.hbm %s1775_s2, 8192 }
  0x2b   : > { %1105 = dma.hbm_to_vmem [thread:$0]  (!%p1471_p2), %s1802_s0, 2048, %s238_s17, [#allocation3], %s1352_s21, %s1352_s21, %s1786_s22  }
  0x2c   : > { %s274_s17 = sshll.u32 %s268_s11, 4  ;;  %p1198_p12 = pnand %p1197_p11, %p1196_p5  ;;  %s1511_s17 = int_to_ptr.vmem [resolvable:$true] %s274_s17 }
  0x2d   : > { %p1201_p8 = scmp.lt.s32.totalorder %s1508_s14, %s1775_s2  ;;  %p1202_p9 = scmp.lt.s32.totalorder %s1200_s9, %s1195_s29 }
  0x2e   : > { %p1199_p3 = pneg %p1198_p12 }
  0x2f   : > { %p1203_p10 = por %p1202_p9, %p1201_p8 }
  0x31   : > { %p1204_p1 = pnand %p1203_p10, %p1199_p3 }
  0x33   : > { %1207 = shalt.err (!%p1204_p1)
}
  0x34   : > { %s1208_s19 = scalar_lea.vmem %s1511_s17, 4096  ;;  %s1354_s11 = smov [#allocation7]  }
  0x35   : > { %p1209_p0 = scmp.ne.s32.totalorder %s1511_s17, %s1208_s19  ;;  %s1213_s30 = sshll.u32 %s1354_s11, 4  ;;  %s1214_s30 = int_to_ptr.vmem [resolvable:$false] %s1213_s30 }
  0x36   : > { %s1215_s10 = scalar_lea.vmem %s1214_s30, 8192  ;;  %p1216_p4 = scmp.lt.s32.totalorder %s1511_s17, %s1214_s30 }
  0x37   : > { %p1211_p5 = pnand %p1209_p0, %p1197_p11  ;;  %p1217_p7 = scmp.lt.s32.totalorder %s1215_s10, %s1208_s19 }
  0x39   : > { %p1212_p12 = pneg %p1211_p5  ;;  %p1218_p13 = por %p1217_p7, %p1216_p4 }
  0x3b   : > { %p1219_p8 = pnand %p1218_p13, %p1212_p12 }
  0x3d   : > { %1222 = shalt.err (!%p1219_p8)
}
  0x3e   : > { %s1791_s22 = smov 128   ;;  %s1356_s20 = smov 8  }
  0x3f   : > { %1112 = dma.hbm_to_vmem [thread:$0]  (!%p1495_p6), %s1508_s14, 4096, %s1511_s17, %s1513_s23, %s1352_s21, %s1791_s22, %s1356_s20  }
  0x40   : > { %s1357_s29 = smov [#allocation5]   ;;  %s1804_s19 = sshll.u32 %s1349_s27, 7 }
  0x41   : > { %s250_s9 = sshll.u32 %s1357_s29, 4  ;;  %s1548_s10 = scalar_lea.hbm %s1776_s3, %s1804_s19  ;;  %s251_s9 = int_to_ptr.vmem [resolvable:$true] %s250_s9 }
  0x42   : > { %s1234_s0 = scalar_lea.vmem %s251_s9, 2048  ;;  %p1805_p13 = pneg %p1471_p2 }
  0x43   : > { %p1235_p4 = scmp.ne.s32.totalorder %s251_s9, %s1234_s0  ;;  %p1242_p3 = scmp.lt.s32.totalorder %s251_s9, %s251_s9 }
  0x44   : > { %p1243_p9 = scmp.lt.s32.totalorder %s1234_s0, %s1234_s0 }
  0x45   : > { %p1237_p0 = pnand %p1235_p4, %p1805_p13 }
  0x46   : > { %p1244_p10 = por %p1243_p9, %p1242_p3 }
  0x47   : > { %p1238_p7 = pneg %p1237_p0 }
  0x49   : > { %p1245_p1 = pnand %p1244_p10, %p1238_p7 }
  0x4b   : > { %1248 = shalt.err (!%p1245_p1)
}
  0x4c   : > { %s1806_s14 = smov 16   ;;  %s288_s19 = scalar_lea.vmem [#allocation8], %s1500_s16 }
  0x4d   : > { %1108 = dma.hbm_to_vmem [thread:$0]  (!%p1471_p2), %s1774_s1, 2048, %s251_s9, [#allocation6], %s1352_s21, %s1352_s21, %s1806_s14  }
  0x4e   : > { %s294_s11 = sshll.u32 %s288_s19, 4  ;;  %s1249_s0 = scalar_lea.hbm %s1548_s10, 4096  ;;  %s295_s11 = int_to_ptr.vmem [resolvable:$true] %s294_s11 }
  0x4f   : > { %p1250_p5 = scmp.ne.s32.totalorder %s1548_s10, %s1249_s0  ;;  %s1254_s22 = scalar_lea.hbm %s1776_s3, 8192 }
  0x50   : > { %p1255_p4 = scmp.lt.s32.totalorder %s1548_s10, %s1776_s3  ;;  %p1256_p13 = scmp.lt.s32.totalorder %s1254_s22, %s1249_s0 }
  0x51   : > { %p1252_p12 = pnand %p1250_p5, %p1197_p11 }
  0x52   : > { %p1257_p0 = por %p1256_p13, %p1255_p4 }
  0x53   : > { %p1253_p8 = pneg %p1252_p12 }
  0x55   : > { %p1258_p2 = pnand %p1257_p0, %p1253_p8 }
  0x57   : > { %1261 = shalt.err (!%p1258_p2)
}
  0x58   : > { %s1262_s16 = scalar_lea.vmem %s295_s11, 4096  ;;  %s1358_s9 = smov [#allocation8]  }
  0x59   : > { %p1263_p7 = scmp.ne.s32.totalorder %s295_s11, %s1262_s16  ;;  %s1267_s14 = sshll.u32 %s1358_s9, 4  ;;  %s1268_s14 = int_to_ptr.vmem [resolvable:$false] %s1267_s14 }
  0x5a   : > { %s1269_s19 = scalar_lea.vmem %s1268_s14, 8192  ;;  %p1270_p10 = scmp.lt.s32.totalorder %s295_s11, %s1268_s14 }
  0x5b   : > { %p1265_p3 = pnand %p1263_p7, %p1197_p11  ;;  %p1271_p1 = scmp.lt.s32.totalorder %s1269_s19, %s1262_s16 }
  0x5d   : > { %p1266_p9 = pneg %p1265_p3  ;;  %p1272_p5 = por %p1271_p1, %p1270_p10 }
  0x5f   : > { %p1273_p12 = pnand %p1272_p5, %p1266_p9 }
  0x61   : > { %1276 = shalt.err (!%p1273_p12)
}
  0x62   : > { %s1807_s22 = smov 128   ;;  %p1808_p11 = scmp.ne.s32.totalorder %s1800_s15, 0 }
  0x63   : > { %1115 = dma.hbm_to_vmem [thread:$0]  (!%p1495_p6), %s1548_s10, 4096, %s295_s11, %s1513_s23, %s1352_s21, %s1807_s22, %s1356_s20  }
  0x64   : > { %324 = sbr.rel (%p1808_p11) target bundleno = 446 (0x1be), region = 48  ;;  %p1809_p8 = scmp.eq.s32.totalorder (!%p1808_p11), %s1424_s28, 0 }
  0x69   : > { %1320 = dma.done.wait (%p1809_p8), [#allocation3], 2048   ;;  %p1810_p4 = pmov %p1809_p8 }
  0x6b   : > { %1322 = vsyncadd (%p1810_p4), [#allocation3], 4294965248  ;;  %p1811_p13 = pmov %p1810_p4 }
  0x6c   : > { %p1812_p0 = pmov %p1810_p4 }
  0x6d   : > { %1324 = dma.done.wait (%p1811_p13), [#allocation6], 2048  }
  0x6e   : > { %1326 = vsyncadd (%p1812_p0), [#allocation6], 4294965248  ;;  %s334_s8 = sand.u32 1, %s1424_s28   ;;  %s1596_s21 = sand.u32 1, %s1341_s25  }
  0x6f   : > { %s968_s15 = sshll.u32 %s1596_s21, 8  ;;  %s335_s23 = scalar_lea.sflag [#allocation3], %s334_s8 }
  0x70   : > { %s1599_s20 = scalar_lea.vmem [#allocation7], %s968_s15  ;;  %p1813_p6 = scmp.ne.s32.totalorder %s1796_s12, 0 }
  0x72   : > { %1328 = dma.done.wait (%p1813_p6), %s335_s23, 8192  }
  0x73   : > { %1330 = vsyncadd (%p1813_p6), %s335_s23, 4294959104  ;;  %s1605_s10 = scalar_lea.vmem [#allocation8], %s968_s15  ;;  %v448_v1 = vld [vmem:[%s1599_s20 + $0xf8] sm:$0xff]  ;;  %v447_v5 = vld [vmem:[%s1599_s20 + $0xf0] sm:$0xff]  ;;  %p392_p2 = scmp.lt.s32.totalorder %s1424_s28, 1 }
  0x74   : > { %v496_v0 = vld [vmem:[%s1605_s10 + $0xf8] sm:$0xff]  ;;  %1032 = vmatprep.subr.mxu1 %v448_v1  ;;  %v495_v4 = vld [vmem:[%s1605_s10 + $0xf0] sm:$0xff]  ;;  %v494_v8 = vld [vmem:[%s1605_s10 + $0xe8] sm:$0xff]  ;;  %s970_s19 = sshll.u32 %s1596_s21, 6  ;;  %s973_s22 = sshll.u32 %s1424_s28, 7 }
  0x75   : > { %v480_v2 = vld [vmem:[%s1605_s10 + $0x78] sm:$0xff]  ;;  %976 = vmatprep.subr.mxu0 %v496_v0  ;;  %v479_v6 = vld [vmem:[%s1605_s10 + $0x70] sm:$0xff]  ;;  %v446_v9 = vld [vmem:[%s1599_s20 + $0xe8] sm:$0xff]  ;;  %s1673_s12 = scalar_select %p392_p2, %s1424_s28, 1 }
  0x76   : > { %v432_v3 = vld [vmem:[%s1599_s20 + $0x78] sm:$0xff]  ;;  %977 = vmatpush3.msra.mxu0 %v480_v2  ;;  %v431_v7 = vld [vmem:[%s1599_s20 + $0x70] sm:$0xff]  ;;  %v478_v10 = vld [vmem:[%s1605_s10 + $0x68] sm:$0xff]  ;;  %s391_s8 = scalar_lea.vmem [#allocation9], %s970_s19  ;;  %s1728_s28 = scalar_lea.hbm %s1780_s7, %s973_s22 }
  0x77   : > { %1033 = vmatpush3.msra.mxu1 %v432_v3  ;;  %978 = vmatprep.subr.mxu0 %v495_v4  ;;  %v430_v11 = vld [vmem:[%s1599_s20 + $0x68] sm:$0xff]  ;;  %v493_v12 = vld [vmem:[%s1605_s10 + $0xe0] sm:$0xff]  ;;  %v492_v16 = vld [vmem:[%s1605_s10 + $0xd8] sm:$0xff]  ;;  %s394_s18 = scalar_lea.vmem %s1777_s4, %s1673_s12  ;;  %s397_s29 = scalar_lea.vmem %s1778_s5, %s1673_s12 }
  0x78   : > { %1034 = vmatprep.subr.mxu1 %v447_v5  ;;  %979 = vmatpush3.msra.mxu0 %v479_v6  ;;  %v445_v13 = vld [vmem:[%s1599_s20 + $0xe0] sm:$0xff]  ;;  %v444_v17 = vld [vmem:[%s1599_s20 + $0xd8] sm:$0xff]  ;;  %v491_v20 = vld [vmem:[%s1605_s10 + $0xd0] sm:$0xff]  ;;  %s400_s14 = scalar_lea.vmem %s1779_s6, %s1673_s12  ;;  %s817_s15 = sshll.u32 %s391_s8, 4  ;;  %s1730_s15 = int_to_ptr.vmem [resolvable:$true] %s817_s15 }
  0x79   : > { %1035 = vmatpush3.msra.mxu1 %v431_v7  ;;  %980 = vmatprep.subr.mxu0 %v494_v8  ;;  %v477_v14 = vld [vmem:[%s1605_s10 + $0x60] sm:$0xff]  ;;  %v476_v18 = vld [vmem:[%s1605_s10 + $0x58] sm:$0xff]  ;;  %v443_v21 = vld [vmem:[%s1599_s20 + $0xd0] sm:$0xff]  ;;  %s1277_s12 = scalar_lea.vmem %s1730_s15, 1024  ;;  %p1814_p3 = scmp.ne.s32.totalorder %s1797_s13, 0 }
  0x7a   : > { %1036 = vmatprep.subr.mxu1 %v446_v9  ;;  %v429_v15 = vld [vmem:[%s1599_s20 + $0x60] sm:$0xff]  ;;  %981 = vmatpush3.msra.mxu0 %v478_v10  ;;  %v428_v19 = vld [vmem:[%s1599_s20 + $0x58] sm:$0xff]  ;;  %v475_v22 = vld [vmem:[%s1605_s10 + $0x50] sm:$0xff]  ;;  %p1278_p7 = scmp.ne.s32.totalorder %s1730_s15, %s1277_s12  ;;  %s1359_s11 = smov [#allocation9]  }
  0x7b   : > { %1037 = vmatpush3.msra.mxu1 %v430_v11  ;;  %982 = vmatprep.subr.mxu0 %v493_v12  ;;  %v427_v23 = vld [vmem:[%s1599_s20 + $0x50] sm:$0xff]  ;;  %v490_v24 = vld [vmem:[%s1605_s10 + $0xc8] sm:$0xff]  ;;  %v489_v28 = vld [vmem:[%s1605_s10 + $0xc0] sm:$0xff]  ;;  %s1281_s0 = sshll.u32 %s1359_s11, 4  ;;  %s1282_s0 = int_to_ptr.vmem [resolvable:$false] %s1281_s0 }
  0x7c   : > { %1038 = vmatprep.subr.mxu1 %v445_v13  ;;  %983 = vmatpush3.msra.mxu0 %v477_v14  ;;  %v442_v25 = vld [vmem:[%s1599_s20 + $0xc8] sm:$0xff]  ;;  %v441_v29 = vld [vmem:[%s1599_s20 + $0xc0] sm:$0xff]  ;;  %v488_v32 = vld [vmem:[%s1605_s10 + $0xb8] sm:$0xff]  ;;  %p1279_p9 = pnand %p1278_p7, %p1814_p3  ;;  %p1284_p1 = scmp.lt.s32.totalorder %s1730_s15, %s1282_s0 }
  0x7d   : > { %1039 = vmatpush3.msra.mxu1 %v429_v15  ;;  %984 = vmatprep.subr.mxu0 %v492_v16  ;;  %v474_v26 = vld [vmem:[%s1605_s10 + $0x48] sm:$0xff]  ;;  %v473_v30 = vld [vmem:[%s1605_s10 + $0x40] sm:$0xff]  ;;  %v440_v33 = vld [vmem:[%s1599_s20 + $0xb8] sm:$0xff] }
  0x7e   : > { %1040 = vmatprep.subr.mxu1 %v444_v17  ;;  %985 = vmatpush3.msra.mxu0 %v476_v18  ;;  %v426_v27 = vld [vmem:[%s1599_s20 + $0x48] sm:$0xff]  ;;  %v425_v31 = vld [vmem:[%s1599_s20 + $0x40] sm:$0xff]  ;;  %v472_v34 = vld [vmem:[%s1605_s10 + $0x38] sm:$0xff]  ;;  %p1280_p10 = pneg %p1279_p9 }
  0x7f   : > { %1041 = vmatpush3.msra.mxu1 %v428_v19  ;;  %986 = vmatprep.subr.mxu0 %v491_v20  ;;  %v424_v35 = vld [vmem:[%s1599_s20 + $0x38] sm:$0xff]  ;;  %v487_v36 = vld [vmem:[%s1605_s10 + $0xb0] sm:$0xff]  ;;  %v486_v40 = vld [vmem:[%s1605_s10 + $0xa8] sm:$0xff] }
  0x80   : > { %1042 = vmatprep.subr.mxu1 %v443_v21  ;;  %987 = vmatpush3.msra.mxu0 %v475_v22  ;;  %v439_v37 = vld [vmem:[%s1599_s20 + $0xb0] sm:$0xff]  ;;  %v438_v41 = vld [vmem:[%s1599_s20 + $0xa8] sm:$0xff]  ;;  %v485_v44 = vld [vmem:[%s1605_s10 + $0xa0] sm:$0xff] }
  0x81   : > { %1043 = vmatpush3.msra.mxu1 %v427_v23  ;;  %988 = vmatprep.subr.mxu0 %v490_v24  ;;  %v471_v38 = vld [vmem:[%s1605_s10 + $0x30] sm:$0xff]  ;;  %v470_v42 = vld [vmem:[%s1605_s10 + $0x28] sm:$0xff]  ;;  %v437_v45 = vld [vmem:[%s1599_s20 + $0xa0] sm:$0xff] }
  0x82   : > { %1044 = vmatprep.subr.mxu1 %v442_v25  ;;  %989 = vmatpush3.msra.mxu0 %v474_v26  ;;  %v423_v39 = vld [vmem:[%s1599_s20 + $0x30] sm:$0xff]  ;;  %v422_v43 = vld [vmem:[%s1599_s20 + $0x28] sm:$0xff]  ;;  %v469_v46 = vld [vmem:[%s1605_s10 + $0x20] sm:$0xff] }
  0x83   : > { %1045 = vmatpush3.msra.mxu1 %v426_v27  ;;  %990 = vmatprep.subr.mxu0 %v489_v28  ;;  %v421_v47 = vld [vmem:[%s1599_s20 + $0x20] sm:$0xff]  ;;  %v484_v48 = vld [vmem:[%s1605_s10 + $0x98] sm:$0xff]  ;;  %v483_v52 = vld [vmem:[%s1605_s10 + $0x90] sm:$0xff] }
  0x84   : > { %1046 = vmatprep.subr.mxu1 %v441_v29  ;;  %991 = vmatpush3.msra.mxu0 %v473_v30  ;;  %v436_v49 = vld [vmem:[%s1599_s20 + $0x98] sm:$0xff]  ;;  %v435_v53 = vld [vmem:[%s1599_s20 + $0x90] sm:$0xff]  ;;  %v482_v56 = vld [vmem:[%s1605_s10 + $0x88] sm:$0xff] }
  0x85   : > { %1047 = vmatpush3.msra.mxu1 %v425_v31  ;;  %992 = vmatprep.subr.mxu0 %v488_v32  ;;  %v468_v50 = vld [vmem:[%s1605_s10 + $0x18] sm:$0xff]  ;;  %v467_v54 = vld [vmem:[%s1605_s10 + $0x10] sm:$0xff]  ;;  %v434_v57 = vld [vmem:[%s1599_s20 + $0x88] sm:$0xff] }
  0x86   : > { %1048 = vmatprep.subr.mxu1 %v440_v33  ;;  %993 = vmatpush3.msra.mxu0 %v472_v34  ;;  %v420_v51 = vld [vmem:[%s1599_s20 + $0x18] sm:$0xff]  ;;  %v419_v55 = vld [vmem:[%s1599_s20 + $0x10] sm:$0xff]  ;;  %v466_v58 = vld [vmem:[%s1605_s10 + $0x8] sm:$0xff] }
  0x87   : > { %1049 = vmatpush3.msra.mxu1 %v424_v35  ;;  %994 = vmatprep.subr.mxu0 %v487_v36  ;;  %v418_v59 = vld [vmem:[%s1599_s20 + $0x8] sm:$0xff]  ;;  %v481_v60 = vld [vmem:[%s1605_s10 + $0x80] sm:$0xff]  ;;  %v452_v4 = vld [vmem:[#allocation5 + $0x18] sm:$0xff] }
  0x88   : > { %1050 = vmatprep.subr.mxu1 %v439_v37  ;;  %995 = vmatpush3.msra.mxu0 %v471_v38  ;;  %v433_v61 = vld [vmem:[%s1599_s20 + $0x80] sm:$0xff]  ;;  %v450_v63 = vld [vmem:[#allocation5 + $0x8] sm:$0xff]  ;;  %v404_v5 = vld [vmem:[#allocation2 + $0x18] sm:$0xff] }
  0x89   : > { %1051 = vmatpush3.msra.mxu1 %v423_v39  ;;  %996 = vmatprep.subr.mxu0 %v486_v40  ;;  %v465_v62 = vld [vmem:[%s1605_s10] sm:$0xff]  ;;  %v402_v1 = vld [vmem:[#allocation2 + $0x8] sm:$0xff]  ;;  %v451_v6 = vld [vmem:[#allocation5 + $0x10] sm:$0xff]  ;;  %s805_s10 = scalar_lea.sflag [#allocation4], %s1596_s21 }
  0x8a   : > { %1052 = vmatprep.subr.mxu1 %v438_v41  ;;  %997 = vmatpush3.msra.mxu0 %v470_v42  ;;  %v417_v0 = vld [vmem:[%s1599_s20] sm:$0xff]  ;;  %v403_v7 = vld [vmem:[#allocation2 + $0x10] sm:$0xff]  ;;  %v454_v8 = vld [vmem:[#allocation5 + $0x28] sm:$0xff] }
  0x8b   : > { %1053 = vmatpush3.msra.mxu1 %v422_v43  ;;  %998 = vmatprep.subr.mxu0 %v485_v44  ;;  %v449_v2 = vld [vmem:[#allocation5] sm:$0xff]  ;;  %v406_v9 = vld [vmem:[#allocation2 + $0x28] sm:$0xff]  ;;  %v456_v12 = vld [vmem:[#allocation5 + $0x38] sm:$0xff] }
  0x8c   : > { %1054 = vmatprep.subr.mxu1 %v437_v45  ;;  %999 = vmatpush3.msra.mxu0 %v469_v46  ;;  %v401_v3 = vld [vmem:[#allocation2] sm:$0xff]  ;;  %v408_v13 = vld [vmem:[#allocation2 + $0x38] sm:$0xff]  ;;  %v455_v14 = vld [vmem:[#allocation5 + $0x30] sm:$0xff] }
  0x8d   : > { %1055 = vmatpush3.msra.mxu1 %v421_v47  ;;  %1000 = vmatprep.subr.mxu0 %v484_v48  ;;  %v453_v10 = vld [vmem:[#allocation5 + $0x20] sm:$0xff]  ;;  %v407_v15 = vld [vmem:[#allocation2 + $0x30] sm:$0xff]  ;;  %v458_v16 = vld [vmem:[#allocation5 + $0x48] sm:$0xff] }
  0x8e   : > { %1056 = vmatprep.subr.mxu1 %v436_v49  ;;  %1001 = vmatpush3.msra.mxu0 %v468_v50  ;;  %v405_v11 = vld [vmem:[#allocation2 + $0x20] sm:$0xff]  ;;  %v410_v17 = vld [vmem:[#allocation2 + $0x48] sm:$0xff]  ;;  %v460_v20 = vld [vmem:[#allocation5 + $0x58] sm:$0xff] }
  0x8f   : > { %1057 = vmatpush3.msra.mxu1 %v420_v51  ;;  %1002 = vmatprep.subr.mxu0 %v483_v52  ;;  %v457_v18 = vld [vmem:[#allocation5 + $0x40] sm:$0xff]  ;;  %v412_v21 = vld [vmem:[#allocation2 + $0x58] sm:$0xff]  ;;  %v459_v22 = vld [vmem:[#allocation5 + $0x50] sm:$0xff] }
  0x90   : > { %1058 = vmatprep.subr.mxu1 %v435_v53  ;;  %1003 = vmatpush3.msra.mxu0 %v467_v54  ;;  %v409_v19 = vld [vmem:[#allocation2 + $0x40] sm:$0xff]  ;;  %v411_v23 = vld [vmem:[#allocation2 + $0x50] sm:$0xff]  ;;  %v462_v24 = vld [vmem:[#allocation5 + $0x68] sm:$0xff] }
  0x91   : > { %1059 = vmatpush3.msra.mxu1 %v419_v55  ;;  %1004 = vmatprep.subr.mxu0 %v482_v56  ;;  %v414_v25 = vld [vmem:[#allocation2 + $0x68] sm:$0xff]  ;;  %v461_v26 = vld [vmem:[#allocation5 + $0x60] sm:$0xff]  ;;  %v464_v28 = vld [vmem:[#allocation5 + $0x78] sm:$0xff] }
  0x92   : > { %1060 = vmatprep.subr.mxu1 %v434_v57  ;;  %1005 = vmatpush3.msra.mxu0 %v466_v58  ;;  %v413_v27 = vld [vmem:[#allocation2 + $0x60] sm:$0xff]  ;;  %v416_v29 = vld [vmem:[#allocation2 + $0x78] sm:$0xff]  ;;  %v463_v30 = vld [vmem:[#allocation5 + $0x70] sm:$0xff] }
  0x93   : > { %1061 = vmatpush3.msra.mxu1 %v418_v59  ;;  %1006 = vmatprep.subr.mxu0 %v481_v60  ;;  %v415_v31 = vld [vmem:[#allocation2 + $0x70] sm:$0xff] }
  0x94   : > { %1062 = vmatprep.subr.mxu1 %v433_v61  ;;  %1007 = vmatpush3.msra.mxu0 %v465_v62  ;;  %v971_v61 = vld [vmem:[%s394_s18] ss:$0 sm:$0xff]  ;;  %s1283_s18 = scalar_lea.vmem %s1282_s0, 2048 }
  0x95   : > { %561 = vmatprep.mubr.f32.mxu0 %v450_v63  ;;  %1063 = vmatpush3.msra.mxu1 %v417_v0  ;;  %p1285_p5 = scmp.lt.s32.totalorder %s1283_s18, %s1277_s12 }
  0x96   : > { %666 = vmatprep.mubr.f32.mxu1 %v402_v1  ;;  %562 = vmatmul.mubr.f32.vlgmr.msra.gmra.mxu0 %v449_v2 }
  0x97   : > { %667 = vmatmul.mubr.f32.vlgmr.msra.gmra.mxu1 %v401_v3  ;;  %566 = vmatprep.mubr.f32.mxu0 %v452_v4  ;;  %p1286_p12 = por %p1285_p5, %p1284_p1 }
  0x98   : > { %671 = vmatprep.mubr.f32.mxu1 %v404_v5 }
  0x99   : > { %p1287_p11 = pnand %p1286_p12, %p1280_p10 }
  0x9a   : > { %567 = vmatmul.mubr.f32.gmra.mxu0 %v451_v6 }
  0x9b   : > { %672 = vmatmul.mubr.f32.gmra.mxu1 %v403_v7  ;;  %571 = vmatprep.mubr.f32.mxu0 %v454_v8 }
  0x9c   : > { %676 = vmatprep.mubr.f32.mxu1 %v406_v9 }
  0x9e   : > { %572 = vmatmul.mubr.f32.gmra.mxu0 %v453_v10 }
  0x9f   : > { %677 = vmatmul.mubr.f32.gmra.mxu1 %v405_v11  ;;  %576 = vmatprep.mubr.f32.mxu0 %v456_v12 }
  0xa0   : > { %681 = vmatprep.mubr.f32.mxu1 %v408_v13 }
  0xa2   : > { %577 = vmatmul.mubr.f32.gmra.mxu0 %v455_v14 }
  0xa3   : > { %682 = vmatmul.mubr.f32.gmra.mxu1 %v407_v15  ;;  %581 = vmatprep.mubr.f32.mxu0 %v458_v16 }
  0xa4   : > { %686 = vmatprep.mubr.f32.mxu1 %v410_v17 }
  0xa6   : > { %582 = vmatmul.mubr.f32.gmra.mxu0 %v457_v18 }
  0xa7   : > { %687 = vmatmul.mubr.f32.gmra.mxu1 %v409_v19  ;;  %586 = vmatprep.mubr.f32.mxu0 %v460_v20 }
  0xa8   : > { %691 = vmatprep.mubr.f32.mxu1 %v412_v21 }
  0xaa   : > { %587 = vmatmul.mubr.f32.gmra.mxu0 %v459_v22 }
  0xab   : > { %692 = vmatmul.mubr.f32.gmra.mxu1 %v411_v23  ;;  %591 = vmatprep.mubr.f32.mxu0 %v462_v24 }
  0xac   : > { %696 = vmatprep.mubr.f32.mxu1 %v414_v25 }
  0xae   : > { %592 = vmatmul.mubr.f32.gmra.mxu0 %v461_v26 }
  0xaf   : > { %697 = vmatmul.mubr.f32.gmra.mxu1 %v413_v27  ;;  %596 = vmatprep.mubr.f32.mxu0 %v464_v28 }
  0xb0   : > { %701 = vmatprep.mubr.f32.mxu1 %v416_v29 }
  0xb2   : > { %597 = vmatmul.mubr.f32.gmra.mxu0 %v463_v30 }
  0xb3   : > { %702 = vmatmul.mubr.f32.gmra.mxu1 %v415_v31 }
 0x156   : > { %v1008_v32 = vpop.f32.mrf.mxu0 }
 0x157   : > { %v1064_v33 = vpop.f32.mrf.mxu1 }
 0x158   : > { %v1009_v34 = vpop.f32.mrf.mxu0 }
 0x159   : > { %v1065_v35 = vpop.f32.mrf.mxu1  ;;  %v1010_v46 = vadd.f32 %v1009_v34, %v1008_v32 }
 0x15a   : > { %v1011_v36 = vpop.f32.mrf.mxu0  ;;  %v1066_v47 = vadd.f32 %v1065_v35, %v1064_v33 }
 0x15b   : > { %v1067_v37 = vpop.f32.mrf.mxu1 }
 0x15c   : > { %v1012_v38 = vpop.f32.mrf.mxu0  ;;  %v669_v57 = vadd.f32 %v1066_v47, %v1010_v46 }
 0x15d   : > { %v1068_v39 = vpop.f32.mrf.mxu1  ;;  %v1013_v42 = vadd.f32 %v1012_v38, %v1011_v36 }
 0x15e   : > { %v1014_v40 = vpop.f32.mrf.mxu0  ;;  %v1069_v43 = vadd.f32 %v1068_v39, %v1067_v37  ;;  %v1681_v4 = vadd.f32 %v971_v61, %v669_v57 }
 0x15f   : > { %v1070_v41 = vpop.f32.mrf.mxu1 }
 0x160   : > { %v1015_v44 = vpop.f32.mrf.mxu0  ;;  %v674_v52 = vadd.f32 %v1069_v43, %v1013_v42  ;;  %v736_v15 = vmul.f32 %v1681_v4, %v1681_v4 }
 0x161   : > { %v1071_v45 = vpop.f32.mrf.mxu1  ;;  %v1016_v48 = vadd.f32 %v1015_v44, %v1014_v40 }
 0x162   : > { %v1072_v49 = vadd.f32 %v1071_v45, %v1070_v41  ;;  %v1017_v50 = vpop.f32.mrf.mxu0  ;;  %v1679_v62 = vadd.f32 %v971_v61, %v674_v52 }
 0x163   : > { %v1073_v51 = vpop.f32.mrf.mxu1 }
 0x164   : > { %v1018_v53 = vpop.f32.mrf.mxu0  ;;  %v679_v58 = vadd.f32 %v1072_v49, %v1016_v48  ;;  %v737_v9 = vmul.f32 %v1679_v62, %v1679_v62  ;;  %v722_v16 = vadd.f32 %v1679_v62, %v1681_v4 }
 0x165   : > { %v1074_v54 = vpop.f32.mrf.mxu1  ;;  %v1019_v55 = vadd.f32 %v1018_v53, %v1017_v50 }
 0x166   : > { %v1075_v56 = vadd.f32 %v1074_v54, %v1073_v51  ;;  %v1020_v59 = vpop.f32.mrf.mxu0  ;;  %v1683_v5 = vadd.f32 %v971_v61, %v679_v58  ;;  %v744_v22 = vadd.f32 %v737_v9, %v736_v15  ;;  %v761_v15 = vld [vmem:[%s397_s29] sm:$0x1] }
 0x167   : > { %v1076_v60 = vpop.f32.mrf.mxu1 }
 0x168   : > { %v684_v63 = vadd.f32 %v1075_v56, %v1019_v55  ;;  %v1021_v0 = vpop.f32.mrf.mxu0  ;;  %v738_v17 = vmul.f32 %v1683_v5, %v1683_v5  ;;  %v723_v23 = vadd.f32 %v722_v16, %v1683_v5 }
 0x169   : > { %v1077_v1 = vpop.f32.mrf.mxu1  ;;  %v1022_v2 = vadd.f32 %v1021_v0, %v1020_v59 }
 0x16a   : > { %v1078_v3 = vadd.f32 %v1077_v1, %v1076_v60  ;;  %v1023_v6 = vpop.f32.mrf.mxu0  ;;  %v1687_v10 = vadd.f32 %v971_v61, %v684_v63  ;;  %v745_v30 = vadd.f32 %v744_v22, %v738_v17 }
 0x16b   : > { %v1079_v7 = vpop.f32.mrf.mxu1 }
 0x16c   : > { %v689_v8 = vadd.f32 %v1078_v3, %v1022_v2  ;;  %v1024_v11 = vpop.f32.mrf.mxu0  ;;  %v739_v24 = vmul.f32 %v1687_v10, %v1687_v10  ;;  %v724_v31 = vadd.f32 %v723_v23, %v1687_v10 }
 0x16d   : > { %v1080_v12 = vpop.f32.mrf.mxu1  ;;  %v1025_v13 = vadd.f32 %v1024_v11, %v1023_v6 }
 0x16e   : > { %v1081_v14 = vadd.f32 %v1080_v12, %v1079_v7  ;;  %v1026_v18 = vpop.f32.mrf.mxu0  ;;  %v1695_v20 = vadd.f32 %v971_v61, %v689_v8  ;;  %v746_v36 = vadd.f32 %v745_v30, %v739_v24 }
 0x16f   : > { %v1082_v19 = vpop.f32.mrf.mxu1 }
 0x170   : > { %v694_v21 = vadd.f32 %v1081_v14, %v1025_v13  ;;  %v1027_v25 = vpop.f32.mrf.mxu0  ;;  %v740_v34 = vmul.f32 %v1695_v20, %v1695_v20  ;;  %v725_v37 = vadd.f32 %v724_v31, %v1695_v20  ;;  %v769_v13 = vlaneseq }
 0x171   : > { %v1083_v26 = vpop.f32.mrf.mxu1  ;;  %v1028_v28 = vadd.f32 %v1027_v25, %v1026_v18 }
 0x172   : > { %v1700_v27 = vadd.f32 %v971_v61, %v694_v21  ;;  %v1084_v29 = vadd.f32 %v1083_v26, %v1082_v19  ;;  %v1029_v32 = vpop.f32.mrf.mxu0  ;;  %v747_v44 = vadd.f32 %v746_v36, %v740_v34  ;;  %v770_v14 = vshrl.u32 %v769_v13, 7  ;;  %v765_v19 = vld [vmem:[%s400_s14] sm:$0x1] }
 0x173   : > { %v1085_v33 = vpop.f32.mrf.mxu1 }
 0x174   : > { %v699_v35 = vadd.f32 %v1084_v29, %v1028_v28  ;;  %v1030_v38 = vpop.f32.mrf.mxu0  ;;  %v741_v40 = vmul.f32 %v1700_v27, %v1700_v27  ;;  %v726_v45 = vadd.f32 %v725_v37, %v1700_v27  ;;  %v771_v16 = vsub.s32 0, %v770_v14 }
 0x175   : > { %v1086_v39 = vpop.f32.mrf.mxu1  ;;  %v1031_v42 = vadd.f32 %v1030_v38, %v1029_v32 }
 0x176   : > { %v720_v41 = vadd.f32 %v971_v61, %v699_v35  ;;  %v1087_v43 = vadd.f32 %v1086_v39, %v1085_v33  ;;  %v748_v48 = vadd.f32 %v747_v44, %v741_v40 }
 0x178   : > { %v742_v46 = vmul.f32 %v720_v41, %v720_v41  ;;  %v704_v47 = vadd.f32 %v1087_v43, %v1031_v42  ;;  %v727_v49 = vadd.f32 %v726_v45, %v720_v41 }
 0x17a   : > { %v721_v50 = vadd.f32 %v971_v61, %v704_v47  ;;  %v749_v51 = vadd.f32 %v748_v48, %v742_v46 }
 0x17c   : > { %v728_v52 = vadd.f32 %v727_v49, %v721_v50  ;;  %v743_v53 = vmul.f32 %v721_v50, %v721_v50 }
 0x17e   : > { %v729_v54 = vrot.slane %v728_v52, 4  ;;  %v750_v55 = vadd.f32 %v749_v51, %v743_v53 }
 0x180   : > { %v730_v56 = vadd.f32 %v729_v54, %v728_v52  ;;  %v751_v57 = vrot.slane %v750_v55, 4 }
 0x182   : > { %v731_v58 = vrot.slane %v730_v56, 2  ;;  %v752_v59 = vadd.f32 %v751_v57, %v750_v55 }
 0x184   : > { %v732_v60 = vadd.f32 %v731_v58, %v730_v56  ;;  %v753_v63 = vrot.slane %v752_v59, 2 }
 0x186   : > { %v733_v0 = vrot.slane %v732_v60, 1  ;;  %v754_v1 = vadd.f32 %v753_v63, %v752_v59 }
 0x188   : > { %v734_v2 = vadd.f32 %v733_v0, %v732_v60  ;;  %v755_v3 = vrot.slane %v754_v1, 1 }
 0x18a   : > { %v735_v6 = vmul.f32 0.015625, %v734_v2  ;;  %v756_v61 = vadd.f32 %v755_v3, %v754_v1 }
 0x18c   : > { %v757_v7 = vmul.f32 0.015625, %v756_v61  ;;  %v758_v8 = vmul.f32 %v735_v6, %v735_v6 }
 0x18e   : > { %v759_v9 = vsub.f32 %v757_v7, %v758_v8 }
 0x190   : > { %v760_v11 = vmax.f32 %v759_v9, 0.0 }
 0x192   : > { %v762_v12 = vadd.f32 1e-05, %v760_v11 }
 0x194   : > { %1167 = vrsqrt.f32 %v762_v12 }
 0x1a1   : > { %v1168_v17 = vpop.eup %1167 }
 0x1a2   : > { %v764_v18 = vmul.f32 %v1168_v17, %v761_v15 }
 0x1a4   : > { %v766_v21 = vmul.f32 %v764_v18, %v735_v6  ;;  %v772_v22 = vrot.slane %v764_v18, %v771_v16 }
 0x1a6   : > { %v767_v23 = vsub.f32 %v765_v19, %v766_v21  ;;  %v774_v24 = vmul.f32 %v772_v22, %v1681_v4  ;;  %v775_v25 = vmul.f32 %v772_v22, %v1679_v62  ;;  %v776_v26 = vmul.f32 %v772_v22, %v1683_v5 }
 0x1a7   : > { %v777_v28 = vmul.f32 %v772_v22, %v1687_v10  ;;  %v778_v30 = vmul.f32 %v772_v22, %v1695_v20  ;;  %v779_v31 = vmul.f32 %v772_v22, %v1700_v27  ;;  %v780_v32 = vmul.f32 %v772_v22, %v720_v41 }
 0x1a8   : > { %v786_v29 = vrot.slane %v767_v23, %v771_v16  ;;  %v781_v33 = vmul.f32 %v772_v22, %v721_v50 }
 0x1aa   : > { %v788_v4 = vadd.f32 %v786_v29, %v774_v24  ;;  %v789_v34 = vadd.f32 %v786_v29, %v775_v25  ;;  %v790_v62 = vadd.f32 %v786_v29, %v776_v26  ;;  %v791_v35 = vadd.f32 %v786_v29, %v777_v28 }
 0x1ab   : > { %v792_v5 = vadd.f32 %v786_v29, %v778_v30  ;;  %v793_v10 = vadd.f32 %v786_v29, %v779_v31  ;;  %v794_v20 = vadd.f32 %v786_v29, %v780_v32  ;;  %v795_v27 = vadd.f32 %v786_v29, %v781_v33 }
 0x1ac   : > { %796 = vst [vmem:[%s391_s8] sm:$0xff] %v788_v4  ;;  %797 = vst [vmem:[%s391_s8 + $0x8] sm:$0xff] %v789_v34 }
 0x1ad   : > { %798 = vst [vmem:[%s391_s8 + $0x10] sm:$0xff] %v790_v62  ;;  %799 = vst [vmem:[%s391_s8 + $0x18] sm:$0xff] %v791_v35 }
 0x1ae   : > { %803 = vst [vmem:[%s391_s8 + $0x38] sm:$0xff] %v795_v27  ;;  %800 = vst [vmem:[%s391_s8 + $0x20] sm:$0xff] %v792_v5 }
 0x1af   : > { %801 = vst [vmem:[%s391_s8 + $0x28] sm:$0xff] %v793_v10  ;;  %802 = vst [vmem:[%s391_s8 + $0x30] sm:$0xff] %v794_v20 }
 0x1b0   : > { %1290 = shalt.err (!%p1287_p11)
}
 0x1b1   : > { %s1291_s30 = scalar_lea.hbm %s1728_s28, 1024  ;;  %s1295_s16 = scalar_lea.hbm %s1780_s7, 2048 }
 0x1b2   : > { %p1292_p8 = scmp.ne.s32.totalorder %s1728_s28, %s1291_s30  ;;  %p1296_p0 = scmp.lt.s32.totalorder %s1728_s28, %s1780_s7 }
 0x1b3   : > { %p1297_p6 = scmp.lt.s32.totalorder %s1295_s16, %s1291_s30 }
 0x1b4   : > { %p1293_p4 = pnand %p1292_p8, %p1814_p3 }
 0x1b5   : > { %p1298_p2 = por %p1297_p6, %p1296_p0 }
 0x1b6   : > { %p1294_p13 = pneg %p1293_p4 }
 0x1b8   : > { %p1299_p7 = pnand %p1298_p2, %p1294_p13 }
 0x1ba   : > { %1302 = shalt.err (!%p1299_p7)
}
 0x1bb   : > { %s1360_s19 = smov 128   ;;  %s1361_s22 = smov 256  }
 0x1bc   : > { %s1362_s8 = smov 8  }
 0x1bd   : > { %1100 = dma.vmem_to_hbm [thread:$0]  (%p1814_p3), %s1730_s15, 1024, %s1728_s28, %s805_s10, %s1360_s19, %s1361_s22, %s1362_s8  }
 0x1be PF: > { %s1815_s23 = sld [smem:[#allocation16_spill]]  ;;  %s832_s20 = sand.u32 1, %s1337_s24  }
 0x1bf   : > { %p1817_p10 = scmp.ge.s32.totalorder %s1349_s27, 2  ;;  %s833_s12 = scalar_lea.sflag [#allocation4], %s832_s20 }
 0x1c4   : > { %p1816_p9 = scmp.ne.s32.totalorder %s1815_s23, 0 }
 0x1c6   : > { %p1117_p1 = pnand %p1817_p10, %p1816_p9 }
 0x1c8   : > { %p1118_p5 = pneg %p1117_p1 }
 0x1ca   : > { %1332 = dma.done.wait (%p1118_p5), %s833_s12, 1024  }
 0x1cb   : > { %1334 = vsyncadd (%p1118_p5), %s833_s12, 4294966272  ;;  %s1818_s27 = sld [smem:[#allocation14_spill]]  ;;  %s1820_s24 = smov %s1341_s25 }
 0x1cc   : > { %s1819_s11 = sld [smem:[#allocation15_spill]]  ;;  %s1821_s25 = smov %s1345_s26 }
 0x1d1   : > { %p19_p12 = scmp.ge.s32.totalorder %s1818_s27, 4  }
 0x1d2   : > { %s1822_s26 = smov %s1819_s11 }
 0x1d3   :  { %21 = sbr.rel (!%p19_p12) target bundleno = 7 (0x7), region = 120 }
 0x1d8   :  { %838 = vsyncpa [#allocation3], 1 }
 0x1d9   :  { %840 = vsyncpa [#allocation3 + $0x1], 1 }
 0x1da   :  { %841 = vsyncpa [#allocation6], 1 }
 0x1db   :  { %842 = vsyncpa [#allocation4], 1 }
 0x1dc   :  { %844 = vsyncpa [#allocation4 + $0x1], 1 }

</bundles_post_ra>
